<compile_context>
chip_gen: v7x
topology: tpu7x:2x2x1
jax: 0.10.0
libtpu: 0.0.40
codegen_flags: <defaults>
</compile_context>

<pallas_src>
import functools

import jax
import jax.numpy as jnp
import numpy as np
from jax import lax
from jax.experimental import pallas as pl
from jax.experimental.pallas import tpu as pltpu

LANES = 128
CHUNK_ROWS = 64                    # inner-loop chunk: 8 f32 vregs per input
MAX_TILE_ROWS = 4096               # 2 MiB per f32 input tile
MIN_GRID_STEPS = 4                 # >= 2 grid steps per TensorCore (v7x)
_XLA_FALLBACK_ELEMS = CHUNK_ROWS * LANES   # below this, pallas overhead wins


def _ncc_partial_kernel(rows_valid, offs_ref, x_ref, y_ref, out_ref):
    """Per-grid-step partial sufficient statistics for shifted data.

    rows_valid : python int (closed over) -- true (unpadded) row count.
    offs_ref   : (2, 128) f32 -- row 0 = off_x broadcast, row 1 = off_y.
    x_ref/y_ref: (tile_rows, 128) input tiles (native dtype, upcast per chunk).
    out_ref    : (1, 5, 128) f32 -- [sum_x, sum_y, sum_xx, sum_yy, sum_xy]
                 of the shifted data, sublane-reduced in-kernel (lane-dense).
    """
    tile_rows = x_ref.shape[0]
    n_chunks = tile_rows // CHUNK_ROWS
    row_base = pl.program_id(0) * tile_rows

    off_x = offs_ref[0:1, :]           # (1, 128), sublane-broadcast below
    off_y = offs_ref[1:2, :]
    # Hoisted once per tile; compared against a per-chunk scalar limit.
    row_iota = lax.broadcasted_iota(jnp.int32, (CHUNK_ROWS, LANES), 0)

    def body(c, carry):
        sx, sy, sxx, syy, sxy = carry
        r0 = pl.multiple_of(c * CHUNK_ROWS, CHUNK_ROWS)
        x = x_ref[pl.ds(r0, CHUNK_ROWS), :].astype(jnp.float32) - off_x
        y = y_ref[pl.ds(r0, CHUNK_ROWS), :].astype(jnp.float32) - off_y

        # Mask rows past the true row count: only the ragged last grid block
        # ever reads unspecified padding.  Cost is ~2 VALU ops per data vreg,
        # well inside the HBM-bound slack for f32.
        rows_left = rows_valid - (row_base + r0)        # scalar i32
        valid = row_iota < rows_left
        x = jnp.where(valid, x, 0.0)
        y = jnp.where(valid, y, 0.0)

        # Layout-preserving split into (8,128) sublane groups; sums are pure
        # VPU adds (no cross-lane work, no full-tile product materialization).
        xg = x.reshape(CHUNK_ROWS // 8, 8, LANES)
        yg = y.reshape(CHUNK_ROWS // 8, 8, LANES)
        return (sx + jnp.sum(xg, axis=0),
                sy + jnp.sum(yg, axis=0),
                sxx + jnp.sum(xg * xg, axis=0),
                syy + jnp.sum(yg * yg, axis=0),
                sxy + jnp.sum(xg * yg, axis=0))

    zero = jnp.zeros((8, LANES), jnp.float32)
    sx, sy, sxx, syy, sxy = lax.fori_loop(
        0, n_chunks, body, (zero, zero, zero, zero, zero))

    # 8 -> 1 sublane reduce on the XLU (a free slot here); shrinks the partial
    # writeback 8x while keeping the last dim lane-dense at 128.
    for j, stat in enumerate((sx, sy, sxx, syy, sxy)):
        out_ref[0, j:j + 1, :] = jnp.sum(stat, axis=0, keepdims=True)


def _partial_sums_pallas(x2, y2, rows_valid, offs2d, tile_rows):
    """Run the kernel over (rows, 128) inputs; return the five reduced sums."""
    rows_padded = x2.shape[0]
    num_tiles = pl.cdiv(rows_padded, tile_rows)
    itemsize = jnp.dtype(x2.dtype).itemsize

    cost = pl.CostEstimate(
        flops=12 * num_tiles * tile_rows * LANES,
        transcendentals=0,
        bytes_accessed=2 * rows_padded * LANES * itemsize
        + num_tiles * (5 + 2) * LANES * 4,
    )

    kernel = functools.partial(_ncc_partial_kernel, rows_valid)

    partial = pl.pallas_call(
        kernel,
        out_shape=jax.ShapeDtypeStruct((num_tiles, 5, LANES), jnp.float32),
        grid_spec=pltpu.PrefetchScalarGridSpec(
            num_scalar_prefetch=0,
            grid=(num_tiles,),
            in_specs=[
                pl.BlockSpec((2, LANES), lambda i: (0, 0)),          # offsets
                pl.BlockSpec((tile_rows, LANES), lambda i: (i, 0)),  # x
                pl.BlockSpec((tile_rows, LANES), lambda i: (i, 0)),  # y
            ],
            out_specs=pl.BlockSpec((1, 5, LANES), lambda i: (i, 0, 0)),
        ),
        compiler_params=pltpu.CompilerParams(
            dimension_semantics=("parallel",),
            vmem_limit_bytes=32 * 1024 * 1024,
        ),
        cost_estimate=cost,
    )(offs2d, x2, y2)

    # Tiny fused XLA reduce of the lane-dense partials -> (5,)
    return jnp.sum(partial, axis=(0, 2))


def _choose_tile_rows(rows):
    """Largest tile (multiple of CHUNK_ROWS) that still leaves >= 4 grid steps."""
    tr = MAX_TILE_ROWS
    while tr > CHUNK_ROWS and pl.cdiv(rows, tr) < MIN_GRID_STEPS:
        tr //= 2
    return tr


def _xla_loss(x_flat, y_flat):
    """Plain XLA path (tiny inputs) -- same math as the torch module."""
    x = x_flat.astype(jnp.float32)
    y = y_flat.astype(jnp.float32)
    mu_x = jnp.mean(x)
    mu_y = jnp.mean(y)
    std_x = jnp.std(x, ddof=1)        # torch.std default: unbiased
    std_y = jnp.std(y, ddof=1)
    numerator = jnp.abs(jnp.mean((x - mu_x) * (y - mu_y)))
    return -numerator / (std_x * std_y)


def ncc_global_loss(prediction, target, mask=None):
    """JAX/Pallas equivalent of NCC_Global_Loss.forward (mask=None path)."""
    # TODO(synk): boolean-mask gather (prediction[mask > 0]) is data-dependent
    # compaction; only the mask=None path is implemented here.
    assert mask is None, "mask path not implemented"
    assert prediction.shape == target.shape

    x = prediction.reshape(-1)        # native dtype; kernel upcasts per chunk
    y = target.reshape(-1)
    n = x.shape[0]

    if n < _XLA_FALLBACK_ELEMS:
        return _xla_loss(x, y)        # fixed pallas_call overhead dominates

    # Shift offsets (first element of each array).  Variance / covariance are
    # shift invariant; shifting in-kernel keeps the one-pass finalization well
    # conditioned even for high-mean inputs (e.g. uint8-range images).
    off_x = x[0]
    off_y = y[0]
    offs2d = jnp.stack([jnp.full((LANES,), off_x, dtype=jnp.float32),
                        jnp.full((LANES,), off_y, dtype=jnp.float32)])

    # Lane remainder (< 128 elements): pad with the offset value so padded
    # elements contribute exactly zero after the in-kernel shift.  Only the
    # rare non-128-aligned case pays this (small) copy.
    lane_pad = (-n) % LANES
    if lane_pad:
        x = jnp.concatenate([x, jnp.full((lane_pad,), off_x, dtype=x.dtype)])
        y = jnp.concatenate([y, jnp.full((lane_pad,), off_y, dtype=y.dtype)])
    rows = (n + lane_pad) // LANES
    x2 = x.reshape(rows, LANES)       # zero-copy when no pad
    y2 = y.reshape(rows, LANES)

    tile_rows = _choose_tile_rows(rows)
    s = _partial_sums_pallas(x2, y2, rows, offs2d, tile_rows)
    sx, sy, sxx, syy, sxy = s[0], s[1], s[2], s[3], s[4]

    # Finalize on shifted sums (n exact as a python int from the static shape).
    nf = float(n)
    mu_x = sx / nf
    mu_y = sy / nf
    var_x = jnp.maximum(sxx - nf * mu_x * mu_x, 0.0) / (nf - 1.0)
    var_y = jnp.maximum(syy - nf * mu_y * mu_y, 0.0) / (nf - 1.0)
    cov = sxy / nf - mu_x * mu_y      # == mean((x - mu_x) * (y - mu_y))
    return -jnp.abs(cov) / (jnp.sqrt(var_x) * jnp.sqrt(var_y))


def _reference_loss(prediction, target):
    return _xla_loss(prediction.reshape(-1), target.reshape(-1))


if __name__ == "__main__":
    key = jax.random.PRNGKey(0)
    k1, k2, k3, k4, k5, k6, k7, k8 = jax.random.split(key, 8)

    # 1) Pallas path, multiple parallel grid steps (256 rows -> 4 tiles).
    pred1 = jax.random.normal(k1, (2, 4, 64, 64), dtype=jnp.float32)
    targ1 = 0.5 * pred1 + 0.1 * jax.random.normal(k2, pred1.shape, jnp.float32)
    loss1 = jax.block_until_ready(ncc_global_loss(pred1, targ1))
    ref1 = jax.block_until_ready(_reference_loss(pred1, targ1))
    np.testing.assert_allclose(np.asarray(loss1), np.asarray(ref1),
                               rtol=1e-4, atol=1e-5)

    # 2) Pallas path with multi-chunk tiles + ragged (masked) last grid block
    #    (1040 rows, tile_rows=256 -> 5 tiles, last tile 16/256 rows valid).
    pred2 = jax.random.normal(k3, (2, 4, 128, 130), dtype=jnp.float32)
    targ2 = 0.6 * pred2 + 0.3 * jax.random.normal(k4, pred2.shape, jnp.float32)
    loss2 = jax.block_until_ready(ncc_global_loss(pred2, targ2))
    ref2 = jax.block_until_ready(_reference_loss(pred2, targ2))
    np.testing.assert_allclose(np.asarray(loss2), np.asarray(ref2),
                               rtol=1e-4, atol=1e-5)

    # 3) Non-128-aligned size (lane pad) + large mean offset: exercises the
    #    offset-shifted, well-conditioned finalization.
    pred3 = jax.random.normal(k5, (3, 3, 40, 40), dtype=jnp.float32) + 50.0
    targ3 = 0.7 * pred3 + 0.2 * jax.random.normal(k6, pred3.shape, jnp.float32)
    loss3 = jax.block_until_ready(ncc_global_loss(pred3, targ3))
    ref3 = jax.block_until_ready(_reference_loss(pred3, targ3))
    np.testing.assert_allclose(np.asarray(loss3), np.asarray(ref3),
                               rtol=1e-4, atol=1e-4)

    # 4) Tiny input -> XLA fallback branch (pallas overhead would dominate).
    pred4 = jax.random.normal(k7, (2, 4, 16, 16), dtype=jnp.float32)
    targ4 = 0.3 * pred4 + 0.2 * jax.random.normal(k8, pred4.shape, jnp.float32)
    loss4 = jax.block_until_ready(ncc_global_loss(pred4, targ4))
    ref4 = jax.block_until_ready(_reference_loss(pred4, targ4))
    np.testing.assert_allclose(np.asarray(loss4), np.asarray(ref4),
                               rtol=1e-4, atol=1e-5)

    print("KERNEL_OK")
</pallas_src>

<mosaic_0001>
module attributes {stable_mosaic.version = 11 : i64} {
  func.func @_ncc_partial_kernel(%arg0: i32, %arg1: memref<2x128xf32, #tpu.memory_space<vmem>>, %arg2: memref<64x128xf32, #tpu.memory_space<vmem>>, %arg3: memref<64x128xf32, #tpu.memory_space<vmem>>, %arg4: memref<1x5x128xf32, #tpu.memory_space<vmem>>) attributes {dimension_semantics = [#tpu.dimension_semantics<parallel>], iteration_bounds = array<i64: 4>, scalar_prefetch = 0 : i64, scratch_operands = 0 : i64, tpu.core_type = #tpu.core_type<tc>, window_params = [{pipeline_mode = #tpu.pipeline_mode<synchronous>, transform_indices = @transform_0, window_bounds = array<i64: 2, 128>}, {transform_indices = @transform_1, window_bounds = array<i64: 64, 128>}, {transform_indices = @transform_2, window_bounds = array<i64: 64, 128>}, {transform_indices = @transform_3, window_bounds = array<i64: 1, 5, 128>}]} {
    %c64_i32 = arith.constant 64 : i32
    %0 = arith.muli %arg0, %c64_i32 : i32
    %c0 = arith.constant 0 : index
    %c0_0 = arith.constant 0 : index
    %1 = vector.load %arg1[%c0, %c0_0] : memref<2x128xf32, #tpu.memory_space<vmem>>, vector<1x128xf32>
    %c1 = arith.constant 1 : index
    %c0_1 = arith.constant 0 : index
    %2 = vector.load %arg1[%c1, %c0_1] : memref<2x128xf32, #tpu.memory_space<vmem>>, vector<1x128xf32>
    %3 = tpu.iota {dimensions = array<i32: 0>} : vector<64x128xi32>
    %cst = arith.constant 0.000000e+00 : f32
    %4 = vector.broadcast %cst : f32 to vector<8x128xf32>
    %c0_i32 = arith.constant 0 : i32
    %c64_i32_2 = arith.constant 64 : i32
    %5 = arith.muli %c0_i32, %c64_i32_2 : i32
    %6 = tpu.assume_multiple %5, 64 : i32
    %7 = arith.index_cast %6 : i32 to index
    %c0_3 = arith.constant 0 : index
    %8 = vector.load %arg2[%7, %c0_3] : memref<64x128xf32, #tpu.memory_space<vmem>>, vector<64x128xf32>
    %9 = vector.broadcast %1 : vector<1x128xf32> to vector<64x128xf32>
    %10 = arith.subf %8, %9 : vector<64x128xf32>
    %11 = arith.index_cast %6 : i32 to index
    %c0_4 = arith.constant 0 : index
    %12 = vector.load %arg3[%11, %c0_4] : memref<64x128xf32, #tpu.memory_space<vmem>>, vector<64x128xf32>
    %13 = vector.broadcast %2 : vector<1x128xf32> to vector<64x128xf32>
    %14 = arith.subf %12, %13 : vector<64x128xf32>
    %15 = arith.addi %0, %6 : i32
    %c256_i32 = arith.constant 256 : i32
    %16 = arith.subi %c256_i32, %15 : i32
    %17 = vector.broadcast %16 : i32 to vector<64x128xi32>
    %18 = arith.cmpi slt, %3, %17 : vector<64x128xi32>
    %cst_5 = arith.constant 0.000000e+00 : f32
    %19 = vector.broadcast %cst_5 : f32 to vector<64x128xf32>
    %20 = arith.select %18, %10, %19 : vector<64x128xi1>, vector<64x128xf32>
    %cst_6 = arith.constant 0.000000e+00 : f32
    %21 = vector.broadcast %cst_6 : f32 to vector<64x128xf32>
    %22 = arith.select %18, %14, %21 : vector<64x128xi1>, vector<64x128xf32>
    %23 = vector.shape_cast %20 : vector<64x128xf32> to vector<8x8x128xf32>
    %24 = vector.shape_cast %22 : vector<64x128xf32> to vector<8x8x128xf32>
    %cst_7 = arith.constant dense<0.000000e+00> : vector<8x128xf32>
    %25 = vector.multi_reduction <add>, %23, %cst_7 [0] : vector<8x8x128xf32> to vector<8x128xf32>
    %26 = arith.addf %4, %25 : vector<8x128xf32>
    %cst_8 = arith.constant dense<0.000000e+00> : vector<8x128xf32>
    %27 = vector.multi_reduction <add>, %24, %cst_8 [0] : vector<8x8x128xf32> to vector<8x128xf32>
    %28 = arith.addf %4, %27 : vector<8x128xf32>
    %29 = arith.mulf %23, %23 : vector<8x8x128xf32>
    %cst_9 = arith.constant dense<0.000000e+00> : vector<8x128xf32>
    %30 = vector.multi_reduction <add>, %29, %cst_9 [0] : vector<8x8x128xf32> to vector<8x128xf32>
    %31 = arith.addf %4, %30 : vector<8x128xf32>
    %32 = arith.mulf %24, %24 : vector<8x8x128xf32>
    %cst_10 = arith.constant dense<0.000000e+00> : vector<8x128xf32>
    %33 = vector.multi_reduction <add>, %32, %cst_10 [0] : vector<8x8x128xf32> to vector<8x128xf32>
    %34 = arith.addf %4, %33 : vector<8x128xf32>
    %35 = arith.mulf %23, %24 : vector<8x8x128xf32>
    %cst_11 = arith.constant dense<0.000000e+00> : vector<8x128xf32>
    %36 = vector.multi_reduction <add>, %35, %cst_11 [0] : vector<8x8x128xf32> to vector<8x128xf32>
    %37 = arith.addf %4, %36 : vector<8x128xf32>
    %c1_i32 = arith.constant 1 : i32
    %cst_12 = arith.constant dense<0.000000e+00> : vector<128xf32>
    %38 = vector.multi_reduction <add>, %26, %cst_12 [0] : vector<8x128xf32> to vector<128xf32>
    %39 = vector.shape_cast %38 : vector<128xf32> to vector<1x128xf32>
    %c0_13 = arith.constant 0 : index
    %c0_14 = arith.constant 0 : index
    %c0_15 = arith.constant 0 : index
    %40 = vector.load %arg4[%c0_13, %c0_14, %c0_15] : memref<1x5x128xf32, #tpu.memory_space<vmem>>, vector<1x1x128xf32>
    %41 = vector.shape_cast %40 : vector<1x1x128xf32> to vector<1x128xf32>
    %42 = vector.shape_cast %39 : vector<1x128xf32> to vector<1x1x128xf32>
    tpu.vector_store %arg4[%c0_13, %c0_14, %c0_15], %42 {strides = array<i32>} : memref<1x5x128xf32, #tpu.memory_space<vmem>>, vector<1x1x128xf32>,
    %cst_16 = arith.constant dense<0.000000e+00> : vector<128xf32>
    %43 = vector.multi_reduction <add>, %28, %cst_16 [0] : vector<8x128xf32> to vector<128xf32>
    %44 = vector.shape_cast %43 : vector<128xf32> to vector<1x128xf32>
    %c0_17 = arith.constant 0 : index
    %c1_18 = arith.constant 1 : index
    %c0_19 = arith.constant 0 : index
    %45 = vector.load %arg4[%c0_17, %c1_18, %c0_19] : memref<1x5x128xf32, #tpu.memory_space<vmem>>, vector<1x1x128xf32>
    %46 = vector.shape_cast %45 : vector<1x1x128xf32> to vector<1x128xf32>
    %47 = vector.shape_cast %44 : vector<1x128xf32> to vector<1x1x128xf32>
    tpu.vector_store %arg4[%c0_17, %c1_18, %c0_19], %47 {strides = array<i32>} : memref<1x5x128xf32, #tpu.memory_space<vmem>>, vector<1x1x128xf32>,
    %cst_20 = arith.constant dense<0.000000e+00> : vector<128xf32>
    %48 = vector.multi_reduction <add>, %31, %cst_20 [0] : vector<8x128xf32> to vector<128xf32>
    %49 = vector.shape_cast %48 : vector<128xf32> to vector<1x128xf32>
    %c0_21 = arith.constant 0 : index
    %c2 = arith.constant 2 : index
    %c0_22 = arith.constant 0 : index
    %50 = vector.load %arg4[%c0_21, %c2, %c0_22] : memref<1x5x128xf32, #tpu.memory_space<vmem>>, vector<1x1x128xf32>
    %51 = vector.shape_cast %50 : vector<1x1x128xf32> to vector<1x128xf32>
    %52 = vector.shape_cast %49 : vector<1x128xf32> to vector<1x1x128xf32>
    tpu.vector_store %arg4[%c0_21, %c2, %c0_22], %52 {strides = array<i32>} : memref<1x5x128xf32, #tpu.memory_space<vmem>>, vector<1x1x128xf32>,
    %cst_23 = arith.constant dense<0.000000e+00> : vector<128xf32>
    %53 = vector.multi_reduction <add>, %34, %cst_23 [0] : vector<8x128xf32> to vector<128xf32>
    %54 = vector.shape_cast %53 : vector<128xf32> to vector<1x128xf32>
    %c0_24 = arith.constant 0 : index
    %c3 = arith.constant 3 : index
    %c0_25 = arith.constant 0 : index
    %55 = vector.load %arg4[%c0_24, %c3, %c0_25] : memref<1x5x128xf32, #tpu.memory_space<vmem>>, vector<1x1x128xf32>
    %56 = vector.shape_cast %55 : vector<1x1x128xf32> to vector<1x128xf32>
    %57 = vector.shape_cast %54 : vector<1x128xf32> to vector<1x1x128xf32>
    tpu.vector_store %arg4[%c0_24, %c3, %c0_25], %57 {strides = array<i32>} : memref<1x5x128xf32, #tpu.memory_space<vmem>>, vector<1x1x128xf32>,
    %cst_26 = arith.constant dense<0.000000e+00> : vector<128xf32>
    %58 = vector.multi_reduction <add>, %37, %cst_26 [0] : vector<8x128xf32> to vector<128xf32>
    %59 = vector.shape_cast %58 : vector<128xf32> to vector<1x128xf32>
    %c0_27 = arith.constant 0 : index
    %c4 = arith.constant 4 : index
    %c0_28 = arith.constant 0 : index
    %60 = vector.load %arg4[%c0_27, %c4, %c0_28] : memref<1x5x128xf32, #tpu.memory_space<vmem>>, vector<1x1x128xf32>
    %61 = vector.shape_cast %60 : vector<1x1x128xf32> to vector<1x128xf32>
    %62 = vector.shape_cast %59 : vector<1x128xf32> to vector<1x1x128xf32>
    tpu.vector_store %arg4[%c0_27, %c4, %c0_28], %62 {strides = array<i32>} : memref<1x5x128xf32, #tpu.memory_space<vmem>>, vector<1x1x128xf32>,
    return
  }
  func.func @transform_0(%arg0: i32) -> (i32, i32) {
    %c0_i32 = arith.constant 0 : i32
    %c0_i32_0 = arith.constant 0 : i32
    %c0_i32_1 = arith.constant 0 : i32
    return %c0_i32, %c0_i32_0 : i32, i32
  }
  func.func @transform_1(%arg0: i32) -> (i32, i32) {
    %c0_i32 = arith.constant 0 : i32
    %c0_i32_0 = arith.constant 0 : i32
    return %arg0, %c0_i32 : i32, i32
  }
  func.func @transform_2(%arg0: i32) -> (i32, i32) {
    %c0_i32 = arith.constant 0 : i32
    %c0_i32_0 = arith.constant 0 : i32
    return %arg0, %c0_i32 : i32, i32
  }
  func.func @transform_3(%arg0: i32) -> (i32, i32, i32) {
    %c0_i32 = arith.constant 0 : i32
    %c0_i32_0 = arith.constant 0 : i32
    %c0_i32_1 = arith.constant 0 : i32
    return %arg0, %c0_i32, %c0_i32_0 : i32, i32, i32
  }
}

</mosaic_0001>

<bundles_post_ra>
// kernel: tpu_custom_call.1
= control target key start
LH: loop header
LB: loop body
LE: loop exit
PB: predicated region body
PF: predicated region fallthrough
CT: control target
= control target key end

     0   :  { %8 = vsyncpa [#allocation3], 0  ;;  %s1072_s0 = inlined_call_operand.hbm [shape: f32[2,128], index: 0, kind: input, shape index: {}]   ;;  %s1073_s1 = inlined_call_operand.hbm [shape: f32[256,128], index: 1, kind: input, shape index: {}]   ;;  %s1074_s2 = inlined_call_operand.hbm [shape: f32[256,128], index: 2, kind: input, shape index: {}]   ;;  %s1075_s3 = inlined_call_operand.vmem [shape: f32[4,5,128], index: 3, kind: output, shape index: {}]  }
   0x1   :  { %9 = vsyncpa [#allocation5], 0 }
   0x2   :  { %11 = vsyncpa [#allocation5 + $0x1], 0  ;;  %s748_s12 = smov 0   ;;  %s750_s13 = smov 0  }
   0x3   :  { %s752_s14 = smov 0   ;;  %s754_s15 = smov 0  }
   0x4 LB: > { %s769_s16 = sadd.s32 1, %s721_s15   ;;  %s45_s17 = sadd.s32 1, %s717_s14  ;;  %s721_s15 = sphi %s754_s15, %s1092_s15   ;;  %s717_s14 = sphi %s752_s14, %s1091_s14   ;;  %s713_s13 = sphi %s750_s13, %s1090_s13   ;;  %s709_s12 = sphi %s748_s12, %s1089_s12  }
   0x5   : > { %s42_s18 = ssub.s32 %s721_s15, %s769_s16  ;;  %p52_p0 = scmp.ne.s32.totalorder %s717_s14, %s713_s13 }
   0x6   : > { %p43_p1 = scmp.eq.s32.totalorder %s42_s18, 0  ;;  %p53_p2 = scmp.eq.s32.totalorder %s721_s15, 0 }
   0x7   : > { %p558_p3 = scmp.lt.s32.totalorder %s721_s15, 4  ;;  %s145_s20 = sand.u32 1, %s721_s15  }
   0x8   : > { %s779_s19 = scalar_select %p43_p1, %s717_s14, %s45_s17  }
   0x9   : > { %p54_p4 = por %p53_p2, %p52_p0  ;;  %s147_s21 = sand.u32 1, %s717_s14  }
   0xa   : > { %s783_s22 = sshll.u32 %s147_s21, 6  ;;  %s536_s23 = sshll.u32 %s721_s15, 10 }
   0xb   : > { %s791_s26 = scalar_lea.hbm %s1073_s1, %s536_s23  ;;  %s149_s27 = scalar_lea.vmem [#allocation4], %s783_s22 }
   0xc   : > { %s156_s28 = sshll.u32 %s149_s27, 4  ;;  %p794_p5 = pnand %p558_p3, %p54_p4  ;;  %s798_s28 = int_to_ptr.vmem [resolvable:$true] %s156_s28 }
   0xd   : > { %s800_s30 = scalar_lea.sflag [#allocation5], %s145_s20  ;;  %s595_s4 = scalar_lea.hbm %s791_s26, 1024 }
   0xe   : > { %p596_p6 = scmp.ne.s32.totalorder %s791_s26, %s595_s4  ;;  %p597_p7 = pneg %p794_p5 }
   0xf   : > { %s600_s7 = scalar_lea.hbm %s1073_s1, 4096  ;;  %p601_p10 = scmp.lt.u32.totalorder %s791_s26, %s1073_s1 }
  0x10   : > { %p598_p8 = pnand %p597_p7, %p596_p6  ;;  %p602_p11 = scmp.lt.u32.totalorder %s600_s7, %s595_s4 }
  0x11   : > { %p604_p13 = scmp.lt.u32.totalorder %s595_s4, %s791_s26 }
  0x12   : > { %p599_p9 = pneg %p598_p8  ;;  %p603_p12 = por %p602_p11, %p601_p10 }
  0x14   : > { %p605_p0 = por %p604_p13, %p603_p12 }
  0x16   : > { %p606_p1 = pnand %p605_p0, %p599_p9 }
  0x18   : > { %609 = shalt.err (!%p606_p1)
}
  0x19   : > { %s610_s10 = scalar_lea.vmem %s798_s28, 1024  ;;  %s723_s11 = smov [#allocation4]  }
  0x1a   : > { %p611_p2 = scmp.ne.s32.totalorder %s798_s28, %s610_s10  ;;  %s615_s17 = sshll.u32 %s723_s11, 4  ;;  %s616_s17 = int_to_ptr.vmem [resolvable:$false] %s615_s17 }
  0x1b   : > { %s617_s18 = scalar_lea.vmem %s616_s17, 2048  ;;  %p618_p6 = scmp.lt.s32.totalorder %s798_s28, %s616_s17 }
  0x1c   : > { %p613_p3 = pnand %p611_p2, %p597_p7  ;;  %p619_p8 = scmp.lt.s32.totalorder %s617_s18, %s610_s10 }
  0x1e   : > { %p614_p4 = pneg %p613_p3  ;;  %p620_p10 = por %p619_p8, %p618_p6 }
  0x20   : > { %p621_p11 = pnand %p620_p10, %p614_p4 }
  0x22   : > { %624 = shalt.err (!%p621_p11)
}
  0x23   : > { %s724_s20 = smov 128   ;;  %s725_s21 = smov 8  }
  0x24   : > { %553 = dma.hbm_to_vmem [thread:$0]  (!%p794_p5), %s791_s26, 1024, %s798_s28, %s800_s30, %s724_s20, %s724_s20, %s725_s21  }
  0x25   : > { %s836_s27 = scalar_lea.hbm %s1074_s2, %s536_s23  ;;  %s170_s4 = scalar_lea.vmem [#allocation6], %s783_s22 }
  0x26   : > { %s177_s5 = sshll.u32 %s170_s4, 4  ;;  %s840_s6 = sadd.s32 4294967295, %s721_s15   ;;  %s853_s5 = int_to_ptr.vmem [resolvable:$true] %s177_s5 }
  0x27   : > { %p58_p9 = scmp.ne.s32.totalorder %s713_s13, %s709_s12  ;;  %p1076_p12 = scmp.eq.s32.totalorder %s840_s6, 0 }
  0x28   : > { %p517_p13 = scmp.ge.s32.totalorder %s721_s15, 1  ;;  %p121_p0 = scmp.lt.s32.totalorder %s721_s15, 5 }
  0x29   : > { %p849_p1 = por %p1076_p12, %p58_p9  ;;  %s726_s23 = smov [#allocation2]  }
  0x2a   : > { %p855_p2 = pnand %p517_p13, %p121_p0  ;;  %s859_s28 = sshll.u32 %s726_s23, 4  ;;  %s135_s28 = int_to_ptr.vmem [resolvable:$true] %s859_s28 }
  0x2b   : > { %s1080_s26 = scalar_select %p849_p1, 1, 0 }
  0x2c   : > { %s1081_s22 = scalar_select %p855_p2, 1, 0 }
  0x2d   : > { %s625_s12 = scalar_lea.hbm %s836_s27, 1024  ;;  %s630_s8 = scalar_lea.hbm %s1074_s2, 4096 }
  0x2e   : > { %p626_p4 = scmp.ne.s32.totalorder %s836_s27, %s625_s12  ;;  %p631_p10 = scmp.lt.u32.totalorder %s836_s27, %s1074_s2 }
  0x2f   : > { %p632_p11 = scmp.lt.u32.totalorder %s630_s8, %s625_s12  ;;  %p634_p13 = scmp.lt.u32.totalorder %s625_s12, %s836_s27 }
  0x30   : > { %p628_p6 = pnand %p626_p4, %p597_p7 }
  0x31   : > { %p633_p9 = por %p632_p11, %p631_p10 }
  0x32   : > { %p629_p8 = pneg %p628_p6 }
  0x33   : > { %p635_p0 = por %p634_p13, %p633_p9 }
  0x35   : > { %p636_p12 = pnand %p635_p0, %p629_p8 }
  0x37   : > { %639 = shalt.err (!%p636_p12)
}
  0x38   : > { %s640_s11 = scalar_lea.vmem %s853_s5, 1024  ;;  %s727_s17 = smov [#allocation6]  }
  0x39   : > { %p641_p4 = scmp.ne.s32.totalorder %s853_s5, %s640_s11  ;;  %s645_s18 = sshll.u32 %s727_s17, 4  ;;  %s646_s18 = int_to_ptr.vmem [resolvable:$false] %s645_s18 }
  0x3a   : > { %s647_s24 = scalar_lea.vmem %s646_s18, 2048  ;;  %p648_p1 = scmp.lt.s32.totalorder %s853_s5, %s646_s18 }
  0x3b   : > { %p643_p6 = pnand %p641_p4, %p597_p7  ;;  %p649_p10 = scmp.lt.s32.totalorder %s647_s24, %s640_s11 }
  0x3d   : > { %p644_p3 = pneg %p643_p6  ;;  %p650_p11 = por %p649_p10, %p648_p1 }
  0x3f   : > { %p651_p9 = pnand %p650_p11, %p644_p3 }
  0x41   : > { %654 = shalt.err (!%p651_p9)
}
  0x42   : > { %556 = dma.hbm_to_vmem [thread:$0]  (!%p794_p5), %s836_s27, 1024, %s853_s5, %s800_s30, %s724_s20, %s724_s20, %s725_s21  }
  0x43   : > { %p1082_p7 = scmp.eq.s32.totalorder %s840_s6, 0  ;;  %p1083_p12 = pneg %p855_p2 }
  0x44   : > { %s655_s23 = scalar_lea.hbm %s1072_s0, 32 }
  0x45   : > { %p896_p8 = pnand %p1083_p12, %p1082_p7  ;;  %p656_p1 = scmp.ne.s32.totalorder %s1072_s0, %s655_s23 }
  0x46   : > { %p662_p0 = scmp.lt.u32.totalorder %s655_s23, %s1072_s0 }
  0x47   : > { %p657_p3 = pneg %p896_p8 }
  0x49   : > { %p658_p5 = pnand %p657_p3, %p656_p1 }
  0x4b   : > { %p659_p13 = pneg %p658_p5 }
  0x4d   : > { %p664_p4 = pnand %p662_p0, %p659_p13 }
  0x4f   : > { %667 = shalt.err (!%p664_p4)
}
  0x50   : > { %s668_s21 = scalar_lea.vmem %s135_s28, 32  ;;  %p676_p9 = scmp.lt.s32.totalorder %s135_s28, %s135_s28 }
  0x51   : > { %p669_p6 = scmp.ne.s32.totalorder %s135_s28, %s668_s21  ;;  %p677_p7 = scmp.lt.s32.totalorder %s668_s21, %s668_s21 }
  0x53   : > { %p671_p10 = pnand %p669_p6, %p657_p3  ;;  %p678_p12 = por %p677_p7, %p676_p9 }
  0x55   : > { %p672_p11 = pneg %p671_p10 }
  0x57   : > { %p679_p2 = pnand %p678_p12, %p672_p11 }
  0x59   : > { %682 = shalt.err (!%p679_p2)
}
  0x5a   : > { %549 = dma.hbm_to_vmem [thread:$0]  (!%p896_p8), %s1072_s0, 32, %s135_s28, [#allocation3]  }
  0x5b   : > { %p1085_p1 = scmp.ne.s32.totalorder %s1081_s22, 0 }
  0x5c   : > { %p1086_p5 = scmp.eq.s32.totalorder (!%p1085_p1), %s840_s6, 0 }
  0x5d   : > { %189 = sbr.rel (%p1085_p1) target bundleno = 156 (0x9c), region = 32 }
  0x64   : > { %700 = dma.done.wait (%p1086_p5), [#allocation3], 32   ;;  %p1087_p3 = pmov %p1086_p5 }
  0x65   : > { %s195_s7 = sand.u32 1, %s840_s6   ;;  %s197_s8 = sand.u32 1, %s713_s13  }
  0x66   : > { %702 = vsyncadd (%p1087_p3), [#allocation3], 4294967264  ;;  %s924_s9 = sshll.u32 %s197_s8, 6  ;;  %s196_s10 = scalar_lea.sflag [#allocation5], %s195_s7 }
  0x67   : > { %s199_s11 = scalar_lea.vmem [#allocation4], %s924_s9  ;;  %p1088_p2 = scmp.ne.s32.totalorder %s1080_s26, 0 }
  0x69   : > { %704 = dma.done.wait (%p1088_p2), %s196_s10, 2048  }
  0x6a   : > { %706 = vsyncadd (%p1088_p2), %s196_s10, 4294965248  ;;  %s531_s22 = sshll.u32 %s840_s6, 6  ;;  %v244_v0 = vlaneseq  ;;  %v532_v7 = vld [vmem:[#allocation2] ss:$0 sm:$0xff]  ;;  %v253_v10 = vld [vmem:[%s199_s11] sm:$0xff]  ;;  %s208_s26 = scalar_lea.vmem [#allocation6], %s924_s9 }
  0x6b   : > { %s294_s28 = ssub.s32 256, %s531_s22  ;;  %v254_v11 = vld [vmem:[%s199_s11 + $0x8] sm:$0xff]  ;;  %v255_v12 = vld [vmem:[%s199_s11 + $0x10] sm:$0xff]  ;;  %v256_v13 = vld [vmem:[%s199_s11 + $0x18] sm:$0xff]  ;;  %v265_v15 = vsub.f32 %v253_v10, %v532_v7  ;;  %p237_p8 = scmp.lt.s32.totalorder %s840_s6, 3 }
  0x6c   : > { %v245_v1 = vshrl.u32 %v244_v0, 7  ;;  %v934_v4 = vstv %s294_s28  ;;  %v257_v14 = vld [vmem:[%s199_s11 + $0x20] sm:$0xff]  ;;  %v266_v16 = vsub.f32 %v254_v11, %v532_v7  ;;  %v258_v18 = vld [vmem:[%s199_s11 + $0x28] sm:$0xff]  ;;  %v259_v19 = vld [vmem:[%s199_s11 + $0x30] sm:$0xff]  ;;  %v267_v21 = vsub.f32 %v255_v12, %v532_v7 }
  0x6d   : > { %v260_v20 = vld [vmem:[%s199_s11 + $0x38] sm:$0xff]  ;;  %v268_v22 = vsub.f32 %v256_v13, %v532_v7  ;;  %v269_v23 = vsub.f32 %v257_v14, %v532_v7  ;;  %v273_v25 = vld [vmem:[%s208_s26] sm:$0xff]  ;;  %v274_v26 = vld [vmem:[%s208_s26 + $0x8] sm:$0xff]  ;;  %v270_v27 = vsub.f32 %v258_v18, %v532_v7  ;;  %v271_v28 = vsub.f32 %v259_v19, %v532_v7  ;;  %s1094_s6 = smov (!%p237_p8, %s840_s6), 3 }
  0x6e   : > { %v246_v2 = vadd.s32 8, %v245_v1  ;;  %v932_v3 = vadd.s32 16, %v245_v1  ;;  %v936_v5 = vadd.s32 24, %v245_v1  ;;  %v938_v6 = vadd.s32 32, %v245_v1  ;;  %v954_v24 = vld [vmem:[#allocation2 + $0x1] ss:$0 sm:$0xff] }
  0x6f   : > { %v940_v8 = vadd.s32 40, %v245_v1  ;;  %v942_v9 = vadd.s32 48, %v245_v1  ;;  %vm296_vm0 = vcmp.lt.s32.totalorder %v245_v1, %v934_v4  ;;  %v946_v17 = vadd.s32 56, %v245_v1  ;;  %v275_v31 = vld [vmem:[%s208_s26 + $0x10] sm:$0xff]  ;;  %v276_v34 = vld [vmem:[%s208_s26 + $0x18] sm:$0xff]  ;;  %v277_v35 = vld [vmem:[%s208_s26 + $0x20] sm:$0xff] }
  0x70   : > { %vm297_vm1 = vcmp.lt.s32.totalorder %v246_v2, %v934_v4  ;;  %vm298_vm2 = vcmp.lt.s32.totalorder %v932_v3, %v934_v4  ;;  %vm299_vm3 = vcmp.lt.s32.totalorder %v936_v5, %v934_v4  ;;  %vm300_vm4 = vcmp.lt.s32.totalorder %v938_v6, %v934_v4  ;;  %v278_v42 = vld [vmem:[%s208_s26 + $0x28] sm:$0xff]  ;;  %v279_v43 = vld [vmem:[%s208_s26 + $0x30] sm:$0xff]  ;;  %v280_v51 = vld [vmem:[%s208_s26 + $0x38] sm:$0xff]  ;;  %s530_s17 = sshll.u32 %s1094_s6, 3 }
  0x71   : > { %v304_v29 = vsel %vm296_vm0, %v265_v15, 0.0  ;;  %v305_v30 = vsel %vm297_vm1, %v266_v16, 0.0  ;;  %v272_v32 = vsub.f32 %v260_v20, %v532_v7  ;;  %vm301_vm5 = vcmp.lt.s32.totalorder %v940_v8, %v934_v4  ;;  %s1051_s25 = scalar_lea.vmem %s1075_s3, %s530_s17 }
  0x72   : > { %vm302_vm6 = vcmp.lt.s32.totalorder %v942_v9, %v934_v4  ;;  %v320_v33 = vadd.f32 %v305_v30, %v304_v29  ;;  %vm303_vm7 = vcmp.lt.s32.totalorder %v946_v17, %v934_v4  ;;  %v306_v36 = vsel %vm298_vm2, %v267_v21, 0.0 }
  0x73   : > { %v285_v37 = vsub.f32 %v273_v25, %v954_v24  ;;  %v286_v38 = vsub.f32 %v274_v26, %v954_v24  ;;  %v975_v39 = vsel %vm299_vm3, %v268_v22, 0.0  ;;  %v980_v40 = vsel %vm300_vm4, %v269_v23, 0.0 }
  0x74   : > { %v321_v41 = vadd.f32 %v320_v33, %v306_v36  ;;  %v287_v44 = vsub.f32 %v275_v31, %v954_v24  ;;  %v986_v45 = vsel %vm301_vm5, %v270_v27, 0.0  ;;  %v991_v46 = vsel %vm302_vm6, %v271_v28, 0.0 }
  0x75   : > { %v288_v47 = vsub.f32 %v276_v34, %v954_v24  ;;  %v289_v48 = vsub.f32 %v277_v35, %v954_v24  ;;  %v998_v49 = vsel %vm303_vm7, %v272_v32, 0.0  ;;  %v312_v52 = vsel %vm296_vm0, %v285_v37, 0.0 }
  0x76   : > { %v322_v50 = vadd.f32 %v321_v41, %v975_v39  ;;  %v313_v53 = vsel %vm297_vm1, %v286_v38, 0.0  ;;  %v290_v54 = vsub.f32 %v278_v42, %v954_v24  ;;  %v291_v55 = vsub.f32 %v279_v43, %v954_v24 }
  0x77   : > { %v328_v56 = vadd.f32 %v313_v53, %v312_v52  ;;  %v336_v57 = vmul.f32 %v304_v29, %v304_v29  ;;  %v314_v59 = vsel %vm298_vm2, %v287_v44, 0.0  ;;  %v337_v60 = vmul.f32 %v305_v30, %v305_v30 }
  0x78   : > { %v323_v58 = vadd.f32 %v322_v50, %v980_v40  ;;  %v338_v61 = vmul.f32 %v306_v36, %v306_v36  ;;  %v292_v62 = vsub.f32 %v280_v51, %v954_v24  ;;  %v315_v63 = vsel %vm299_vm3, %v288_v47, 0.0 }
  0x79   : > { %v316_v0 = vsel %vm300_vm4, %v289_v48, 0.0  ;;  %v329_v1 = vadd.f32 %v328_v56, %v314_v59  ;;  %v339_v3 = vmul.f32 %v975_v39, %v975_v39  ;;  %v344_v7 = vadd.f32 %v337_v60, %v336_v57 }
  0x7a   : > { %v324_v2 = vadd.f32 %v323_v58, %v986_v45  ;;  %v352_v10 = vmul.f32 %v312_v52, %v312_v52  ;;  %v317_v11 = vsel %vm301_vm5, %v290_v54, 0.0  ;;  %v353_v5 = vmul.f32 %v313_v53, %v313_v53 }
  0x7b   : > { %v330_v12 = vadd.f32 %v329_v1, %v315_v63  ;;  %v354_v13 = vmul.f32 %v314_v59, %v314_v59  ;;  %v318_v6 = vsel %vm302_vm6, %v291_v55, 0.0  ;;  %v340_v15 = vmul.f32 %v980_v40, %v980_v40 }
  0x7c   : > { %v325_v14 = vadd.f32 %v324_v2, %v991_v46  ;;  %v345_v16 = vadd.f32 %v344_v7, %v338_v61  ;;  %v341_v19 = vmul.f32 %v986_v45, %v986_v45  ;;  %v355_v20 = vmul.f32 %v315_v63, %v315_v63 }
  0x7d   : > { %v331_v18 = vadd.f32 %v330_v12, %v316_v0  ;;  %v360_v8 = vadd.f32 %v353_v5, %v352_v10  ;;  %v368_v23 = vmul.f32 %v312_v52, %v304_v29  ;;  %v369_v24 = vmul.f32 %v313_v53, %v305_v30 }
  0x7e   : > { %v326_v21 = vadd.f32 %v325_v14, %v998_v49  ;;  %v346_v22 = vadd.f32 %v345_v16, %v339_v3  ;;  %v319_v9 = vsel %vm303_vm7, %v292_v62, 0.0  ;;  %v356_v26 = vmul.f32 %v316_v0, %v316_v0 }
  0x7f   : > { %v332_v25 = vadd.f32 %v331_v18, %v317_v11  ;;  %v361_v27 = vadd.f32 %v360_v8, %v354_v13  ;;  %v342_v31 = vmul.f32 %v991_v46, %v991_v46  ;;  %v370_v33 = vmul.f32 %v314_v59, %v306_v36 }
  0x80   : > { %v384_v28 = vrot.slane %v326_v21, 4  ;;  %v347_v32 = vadd.f32 %v346_v22, %v340_v15  ;;  %v343_v35 = vmul.f32 %v998_v49, %v998_v49  ;;  %v357_v37 = vmul.f32 %v317_v11, %v317_v11 }
  0x81   : > { %v333_v34 = vadd.f32 %v332_v25, %v318_v6  ;;  %v362_v29 = vadd.f32 %v361_v27, %v355_v20  ;;  %v371_v17 = vmul.f32 %v315_v63, %v975_v39  ;;  %v376_v38 = vadd.f32 %v369_v24, %v368_v23 }
  0x82   : > { %v385_v30 = vadd.f32 %v384_v28, %v326_v21  ;;  %v348_v4 = vadd.f32 %v347_v32, %v341_v19  ;;  %v358_v42 = vmul.f32 %v318_v6, %v318_v6  ;;  %v372_v36 = vmul.f32 %v316_v0, %v980_v40 }
  0x83   : > { %v334_v41 = vadd.f32 %v333_v34, %v319_v9  ;;  %v363_v43 = vadd.f32 %v362_v29, %v356_v26  ;;  %v377_v48 = vadd.f32 %v376_v38, %v370_v33  ;;  %v359_v51 = vmul.f32 %v319_v9, %v319_v9 }
  0x84   : > { %v386_v44 = vrot.slane %v385_v30, 2  ;;  %v349_v47 = vadd.f32 %v348_v4, %v342_v31  ;;  %v373_v55 = vmul.f32 %v317_v11, %v986_v45  ;;  %v374_v60 = vmul.f32 %v318_v6, %v991_v46 }
  0x85   : > { %v391_v50 = vrot.slane %v334_v41, 4  ;;  %v364_v52 = vadd.f32 %v363_v43, %v357_v37  ;;  %v378_v56 = vadd.f32 %v377_v48, %v371_v17  ;;  %v375_v45 = vmul.f32 %v319_v9, %v998_v49 }
  0x86   : > { %v387_v53 = vadd.f32 %v386_v44, %v385_v30  ;;  %v350_v54 = vadd.f32 %v349_v47, %v343_v35 }
  0x87   : > { %v392_v57 = vadd.f32 %v391_v50, %v334_v41  ;;  %v365_v39 = vadd.f32 %v364_v52, %v358_v42  ;;  %v379_v61 = vadd.f32 %v378_v56, %v372_v36 }
  0x88   : > { %v388_v58 = vrot.slane %v387_v53, 1  ;;  %v398_v59 = vrot.slane %v350_v54, 4 }
  0x89   : > { %v393_v40 = vrot.slane %v392_v57, 2  ;;  %v366_v62 = vadd.f32 %v365_v39, %v359_v51  ;;  %v380_v1 = vadd.f32 %v379_v61, %v373_v55 }
  0x8a   : > { %v389_v63 = vadd.f32 %v388_v58, %v387_v53  ;;  %v399_v0 = vadd.f32 %v398_v59, %v350_v54 }
  0x8b   : > { %v394_v2 = vadd.f32 %v393_v40, %v392_v57  ;;  %v405_v3 = vrot.slane %v366_v62, 4  ;;  %v381_v7 = vadd.f32 %v380_v1, %v374_v60 }
  0x8c   : > { %390 = vst [vmem:[%s1051_s25] sm:$0x1] %v389_v63  ;;  %v400_v46 = vrot.slane %v399_v0, 2 }
  0x8d   : > { %v395_v10 = vrot.slane %v394_v2, 1  ;;  %v406_v11 = vadd.f32 %v405_v3, %v366_v62  ;;  %v382_v5 = vadd.f32 %v381_v7, %v375_v45 }
  0x8e   : > { %v401_v12 = vadd.f32 %v400_v46, %v399_v0 }
  0x8f   : > { %v396_v13 = vadd.f32 %v395_v10, %v394_v2  ;;  %v407_v14 = vrot.slane %v406_v11, 2  ;;  %v412_v15 = vrot.slane %v382_v5, 4 }
  0x90   : > { %v402_v6 = vrot.slane %v401_v12, 1 }
  0x91   : > { %397 = vst [vmem:[%s1051_s25 + $0x1] sm:$0x1] %v396_v13  ;;  %v408_v16 = vadd.f32 %v407_v14, %v406_v11  ;;  %v413_v18 = vadd.f32 %v412_v15, %v382_v5 }
  0x92   : > { %v403_v49 = vadd.f32 %v402_v6, %v401_v12 }
  0x93   : > { %v409_v19 = vrot.slane %v408_v16, 1  ;;  %v414_v20 = vrot.slane %v413_v18, 2 }
  0x94   : > { %404 = vst [vmem:[%s1051_s25 + $0x2] sm:$0x1] %v403_v49 }
  0x95   : > { %v410_v8 = vadd.f32 %v409_v19, %v408_v16  ;;  %v415_v21 = vadd.f32 %v414_v20, %v413_v18 }
  0x97   : > { %411 = vst [vmem:[%s1051_s25 + $0x3] sm:$0x1] %v410_v8  ;;  %v416_v22 = vrot.slane %v415_v21, 1 }
  0x99   : > { %v417_v23 = vadd.f32 %v416_v22, %v415_v21 }
  0x9b   : > { %418 = vst [vmem:[%s1051_s25 + $0x4] sm:$0x1] %v417_v23 }
  0x9c PF: > { %p14_p13 = scmp.ge.s32.totalorder %s769_s16, 6   ;;  %s1089_s12 = smov %s713_s13 }
  0x9d   : > { %s1090_s13 = smov %s717_s14  ;;  %s1091_s14 = smov %s779_s19 }
  0x9e   : > { %s1092_s15 = smov %s769_s16  ;;  %16 = sbr.rel (!%p14_p13) target bundleno = 4 (0x4), region = 88 }
  0xa5   :  { %438 = vsyncpa [#allocation3], 1 }
  0xa6   :  { %440 = vsyncpa [#allocation3 + $0x1], 1 }
  0xa7   :  { %441 = vsyncpa [#allocation5], 1 }
  0xa8   :  { %443 = vsyncpa [#allocation5 + $0x1], 1 }

</bundles_post_ra>
